<compile_context>
chip_gen: v6e
topology: v6e:2x2x1
jax: 0.10.0
libtpu: 0.0.40
codegen_flags: <defaults>
</compile_context>

<pallas_src>
import functools
import math

import jax
import jax.numpy as jnp
from jax.experimental import pallas as pl
from jax.experimental.pallas import tpu as pltpu

EPS = 1e-5  # torch GroupNorm default


def _upsample_kernel(x_ref, w_ref, p_ref, o_ref, ybuf_ref, *, cout, hdim, wdim):
    """One batch sample per grid step.

    x_ref   : (1, Cin, H, W)      input sample
    w_ref   : (C4, Cin)           Linear weight, rows regrouped by quadrant q=dy*2+dx
    p_ref   : (C4, 3)             packed [bias | gamma | beta], same row order
    o_ref   : (1, Cout, 2H, 2W)   final pixel-shuffled output
    ybuf_ref: (H, C4, W)          VMEM scratch holding ReLU(Linear(x)) for this sample
    """
    c4 = 4 * cout
    inv_n = 1.0 / float(c4 * hdim * wdim)
    highest = jax.lax.Precision.HIGHEST

    w = w_ref[...]                       # (C4, Cin)
    bias = p_ref[:, 0:1]                 # (C4, 1) -> broadcasts over W lanes
    gamma = p_ref[:, 1:2]
    beta = p_ref[:, 2:3]

    # Exact 0/1 lane-interleave operators (built once per grid step, loop-invariant):
    #   (Cout, W) @ e_even -> values land in even output columns 2w
    #   (Cout, W) @ e_odd  -> values land in odd  output columns 2w+1
    col = jax.lax.broadcasted_iota(jnp.int32, (wdim, 2 * wdim), 1)
    two_row = 2 * jax.lax.broadcasted_iota(jnp.int32, (wdim, 2 * wdim), 0)
    e_even = (col == two_row).astype(jnp.float32)
    e_odd = (col == two_row + 1).astype(jnp.float32)

    # ---- Pass 1: per-row Linear + bias + ReLU into VMEM scratch; accumulate sum. ----
    def pass1(h, s1):
        xr = x_ref[0, :, h, :]                                      # (Cin, W)
        y = jnp.dot(w, xr, precision=highest,
                    preferred_element_type=jnp.float32) + bias      # (C4, W) on MXU
        y = jnp.maximum(y, 0.0)
        ybuf_ref[h] = y
        return s1 + jnp.sum(y)

    s1 = jax.lax.fori_loop(0, hdim, pass1, jnp.float32(0.0))
    mean = s1 * inv_n

    # ---- Pass 2: centered variance (y stays resident in VMEM; avoids cancellation). --
    def pass2(h, s2):
        d = ybuf_ref[h] - mean
        return s2 + jnp.sum(d * d)

    s2 = jax.lax.fori_loop(0, hdim, pass2, jnp.float32(0.0))
    inv_std = jax.lax.rsqrt(s2 * inv_n + EPS)                        # EUP
    scale = gamma * inv_std                                          # (C4, 1)
    shift = beta - mean * scale                                      # (C4, 1)

    # ---- Pass 3: normalize + pixel-shuffle + store final layout. ---------------------
    # Quadrant q = dy*2 + dx occupies rows [q*Cout, (q+1)*Cout) of yn.
    def pass3(h, carry):
        yn = ybuf_ref[h] * scale + shift                             # (C4, W) normalized

        def lane_interleave(q_even, q_odd):
            a = yn[q_even * cout:(q_even + 1) * cout, :]             # dx = 0 channels
            b = yn[q_odd * cout:(q_odd + 1) * cout, :]               # dx = 1 channels
            return (jnp.dot(a, e_even, precision=highest,
                            preferred_element_type=jnp.float32)
                    + jnp.dot(b, e_odd, precision=highest,
                              preferred_element_type=jnp.float32))   # (Cout, 2W)

        o_ref[0, :, 2 * h, :] = lane_interleave(0, 1)                # dy = 0 row
        o_ref[0, :, 2 * h + 1, :] = lane_interleave(2, 3)            # dy = 1 row
        return carry

    jax.lax.fori_loop(0, hdim, pass3, 0)


def _round_up(n, m):
    return ((n + m - 1) // m) * m


def _padded_f32_bytes(shape):
    """f32 bytes of a VMEM block with the minor-two dims padded to (8, 128)."""
    if len(shape) == 1:
        return 4 * _round_up(shape[0], 128)
    lead = math.prod(shape[:-2]) if len(shape) > 2 else 1
    return 4 * lead * _round_up(shape[-2], 8) * _round_up(shape[-1], 128)


def _vmem_budget(needed_bytes):
    """Per-generation VMEM budget: ~3/4 of physical capacity (headroom for compiler
    scratch / spills), never less than what the blocks need + slack."""
    try:
        capacity = int(pltpu.get_tpu_info().vmem_capacity_bytes)
    except Exception:  # CPU interpret / older runtimes: assume the smallest (v7x) VMEM
        capacity = 64 << 20
    cap = (capacity * 3) // 4
    return int(min(cap, max(16 << 20, needed_bytes + (4 << 20))))


def conv_transpose2d_using_linear(x_nchw, weight, bias, gamma, beta, out_channels):
    """x_nchw: [B, Cin, H, W] f32. weight: [4*Cout, Cin] (torch Linear layout).
    Returns the pixel-shuffled, GroupNorm'd output [B, Cout, 2H, 2W]."""
    x_nchw = x_nchw.astype(jnp.float32)
    B, Cin, H, W = x_nchw.shape
    Cout = out_channels
    C4 = 4 * Cout

    # Regroup all per-channel parameters by pixel-shuffle quadrant q = dy*2 + dx, so
    # the kernel's quadrant slices are contiguous rows (original channel f = c*4 + q).
    w_re = (weight.astype(jnp.float32)
            .reshape(Cout, 4, Cin).transpose(1, 0, 2).reshape(C4, Cin))

    def regroup(v):
        return v.astype(jnp.float32).reshape(Cout, 4).T.reshape(C4)

    params = jnp.stack([regroup(bias), regroup(gamma), regroup(beta)], axis=-1)  # (C4,3)

    # VMEM accounting: double-buffered in/out blocks + the per-sample scratch.
    x_blk = _padded_f32_bytes((1, Cin, H, W))
    o_blk = _padded_f32_bytes((1, Cout, 2 * H, 2 * W))
    ybuf_blk = _padded_f32_bytes((H, C4, W))
    need = 2 * x_blk + 2 * o_blk + ybuf_blk + _padded_f32_bytes((C4, Cin)) \
        + _padded_f32_bytes((C4, 3)) + (1 << 20)
    vmem_budget = _vmem_budget(need)

    kernel = functools.partial(_upsample_kernel, cout=Cout, hdim=H, wdim=W)

    out = pl.pallas_call(
        kernel,
        out_shape=jax.ShapeDtypeStruct((B, Cout, 2 * H, 2 * W), jnp.float32),
        grid=(B,),
        in_specs=[
            pl.BlockSpec((1, Cin, H, W), lambda b: (b, 0, 0, 0)),
            pl.BlockSpec((C4, Cin), lambda b: (0, 0)),
            pl.BlockSpec((C4, 3), lambda b: (0, 0)),
        ],
        out_specs=pl.BlockSpec((1, Cout, 2 * H, 2 * W), lambda b: (b, 0, 0, 0)),
        scratch_shapes=[pltpu.VMEM((H, C4, W), jnp.float32)],
        compiler_params=pltpu.CompilerParams(
            dimension_semantics=("parallel",),
            vmem_limit_bytes=vmem_budget,
        ),
    )(x_nchw, w_re, params)
    return out


def _reference(x_nchw, weight, bias, gamma, beta, out_channels):
    """Pure-JAX replica of the torch module (weight in torch [out, in] layout)."""
    B, Cin, H, W = x_nchw.shape
    C4 = 4 * out_channels
    xr = jnp.transpose(x_nchw, (0, 2, 3, 1)).reshape(B * H * W, Cin)
    y = jnp.maximum(
        jnp.dot(xr, weight.T, precision=jax.lax.Precision.HIGHEST) + bias, 0.0)
    y = y.reshape(B, H, W, C4)
    y = jnp.transpose(y, (0, 3, 1, 2))                  # [B, C4, H, W]
    mean = jnp.mean(y, axis=(1, 2, 3), keepdims=True)
    var = jnp.var(y, axis=(1, 2, 3), keepdims=True)
    y = (y - mean) / jnp.sqrt(var + EPS)
    y = y * gamma.reshape(1, C4, 1, 1) + beta.reshape(1, C4, 1, 1)
    y = y.reshape(B, out_channels, 2, 2, H, W)
    y = jnp.transpose(y, (0, 1, 4, 2, 5, 3))
    return y.reshape(B, out_channels, 2 * H, 2 * W)


if __name__ == "__main__":
    B, Cin, Cout, H, W = 2, 4, 4, 16, 16
    C4 = 4 * Cout

    key = jax.random.PRNGKey(0)
    kx, kw, kb, kg, kbe = jax.random.split(key, 5)

    x = jax.random.normal(kx, (B, Cin, H, W), dtype=jnp.float32)
    # torch Linear weight layout: [out_features, in_features] = [C4, Cin]
    weight = jax.random.normal(kw, (C4, Cin), dtype=jnp.float32) * 0.1
    bias = jax.random.normal(kb, (C4,), dtype=jnp.float32) * 0.1
    gamma = 1.0 + 0.1 * jax.random.normal(kg, (C4,), dtype=jnp.float32)
    beta = 0.1 * jax.random.normal(kbe, (C4,), dtype=jnp.float32)

    out = conv_transpose2d_using_linear(x, weight, bias, gamma, beta, Cout)
    out = jax.block_until_ready(out)

    ref = _reference(x, weight, bias, gamma, beta, Cout)
    assert out.shape == (B, Cout, 2 * H, 2 * W)
    assert jnp.allclose(out, ref, atol=1e-4, rtol=1e-4)

    print("KERNEL_OK")
</pallas_src>

<mosaic_0001>
module attributes {stable_mosaic.version = 11 : i64} {
  func.func @_upsample_kernel(%arg0: i32, %arg1: memref<1x4x16x16xf32, #tpu.memory_space<vmem>>, %arg2: memref<16x4xf32, #tpu.memory_space<vmem>>, %arg3: memref<16x3xf32, #tpu.memory_space<vmem>>, %arg4: memref<1x4x32x32xf32, #tpu.memory_space<vmem>>, %arg5: memref<16x16x16xf32, #tpu.memory_space<vmem>>) attributes {dimension_semantics = [#tpu.dimension_semantics<parallel>], iteration_bounds = array<i64: 2>, scalar_prefetch = 0 : i64, scratch_operands = 1 : i64, tpu.core_type = #tpu.core_type<tc>, window_params = [{transform_indices = @transform_0, window_bounds = array<i64: 1, 4, 16, 16>}, {pipeline_mode = #tpu.pipeline_mode<synchronous>, transform_indices = @transform_1, window_bounds = array<i64: 16, 4>}, {pipeline_mode = #tpu.pipeline_mode<synchronous>, transform_indices = @transform_2, window_bounds = array<i64: 16, 3>}, {transform_indices = @transform_3, window_bounds = array<i64: 1, 4, 32, 32>}]} {
    %c0 = arith.constant 0 : index
    %c0_0 = arith.constant 0 : index
    %0 = vector.load %arg2[%c0, %c0_0] : memref<16x4xf32, #tpu.memory_space<vmem>>, vector<16x4xf32>
    %c0_1 = arith.constant 0 : index
    %c0_2 = arith.constant 0 : index
    %1 = vector.load %arg3[%c0_1, %c0_2] : memref<16x3xf32, #tpu.memory_space<vmem>>, vector<16x1xf32>
    %c0_3 = arith.constant 0 : index
    %c1 = arith.constant 1 : index
    %2 = vector.load %arg3[%c0_3, %c1] : memref<16x3xf32, #tpu.memory_space<vmem>>, vector<16x1xf32>
    %c0_4 = arith.constant 0 : index
    %c2 = arith.constant 2 : index
    %3 = vector.load %arg3[%c0_4, %c2] : memref<16x3xf32, #tpu.memory_space<vmem>>, vector<16x1xf32>
    %4 = tpu.iota {dimensions = array<i32: 1>} : vector<16x32xi32>
    %5 = tpu.iota {dimensions = array<i32: 0>} : vector<16x32xi32>
    %c2_i32 = arith.constant 2 : i32
    %6 = vector.broadcast %c2_i32 : i32 to vector<16x32xi32>
    %7 = arith.muli %6, %5 : vector<16x32xi32>
    %8 = arith.cmpi eq, %4, %7 : vector<16x32xi32>
    %9 = arith.extui %8 : vector<16x32xi1> to vector<16x32xi32>
    %10 = arith.sitofp %9 : vector<16x32xi32> to vector<16x32xf32>
    %c1_i32 = arith.constant 1 : i32
    %11 = vector.broadcast %c1_i32 : i32 to vector<16x32xi32>
    %12 = arith.addi %7, %11 : vector<16x32xi32>
    %13 = arith.cmpi eq, %4, %12 : vector<16x32xi32>
    %14 = arith.extui %13 : vector<16x32xi1> to vector<16x32xi32>
    %15 = arith.sitofp %14 : vector<16x32xi32> to vector<16x32xf32>
    %cst = arith.constant 0.000000e+00 : f32
    %c0_i32 = arith.constant 0 : i32
    %c16_i32 = arith.constant 16 : i32
    %16 = arith.addi %c0_i32, %c16_i32 : i32
    %c1_i32_5 = arith.constant 1 : i32
    %17 = scf.for %arg6 = %c0_i32 to %16 step %c1_i32_5 iter_args(%arg7 = %cst) -> (f32)  : i32 {
      %c0_19 = arith.constant 0 : index
      %c0_20 = arith.constant 0 : index
      %30 = arith.index_cast %arg6 : i32 to index
      %c0_21 = arith.constant 0 : index
      %31 = vector.load %arg1[%c0_19, %c0_20, %30, %c0_21] : memref<1x4x16x16xf32, #tpu.memory_space<vmem>>, vector<1x4x1x16xf32>
      %32 = vector.shape_cast %31 : vector<1x4x1x16xf32> to vector<4x16xf32>
      %cst_22 = arith.constant dense<0.000000e+00> : vector<16x16xf32>
      %33 = tpu.matmul %0, %32, %cst_22 {dimension_numbers = #tpu.dot_dimension_numbers<[1], [0], [0], [1], [0, 0, 1, 1], [], []>, precision = #tpu.contract_precision<fp32>} : vector<16x4xf32>, vector<4x16xf32>, vector<16x16xf32> -> vector<16x16xf32>
      %34 = vector.broadcast %1 : vector<16x1xf32> to vector<16x16xf32>
      %35 = arith.addf %33, %34 : vector<16x16xf32>
      %cst_23 = arith.constant 0.000000e+00 : f32
      %36 = vector.broadcast %cst_23 : f32 to vector<16x16xf32>
      %37 = arith.maximumf %35, %36 : vector<16x16xf32>
      %38 = arith.index_cast %arg6 : i32 to index
      %c0_24 = arith.constant 0 : index
      %c0_25 = arith.constant 0 : index
      %39 = vector.load %arg5[%38, %c0_24, %c0_25] : memref<16x16x16xf32, #tpu.memory_space<vmem>>, vector<1x16x16xf32>
      %40 = vector.shape_cast %39 : vector<1x16x16xf32> to vector<16x16xf32>
      %41 = vector.shape_cast %37 : vector<16x16xf32> to vector<1x16x16xf32>
      tpu.vector_store %arg5[%38, %c0_24, %c0_25], %41 {strides = array<i32>} : memref<16x16x16xf32, #tpu.memory_space<vmem>>, vector<1x16x16xf32>,
      %42 = vector.shape_cast %37 : vector<16x16xf32> to vector<1x16x16xf32>
      %cst_26 = arith.constant dense<0.000000e+00> : vector<1xf32>
      %43 = vector.multi_reduction <add>, %42, %cst_26 [1, 2] : vector<1x16x16xf32> to vector<1xf32>
      %44 = vector.shape_cast %43 : vector<1xf32> to vector<1x1x1xf32>
      %45 = vector.extract %44[0, 0, 0] : f32 from vector<1x1x1xf32>
      %46 = arith.addf %arg7, %45 : f32
      scf.yield %46 : f32
    }
    %c16_i32_6 = arith.constant 16 : i32
    %cst_7 = arith.constant 2.44140625E-4 : f32
    %18 = arith.mulf %17, %cst_7 : f32
    %cst_8 = arith.constant 0.000000e+00 : f32
    %c0_i32_9 = arith.constant 0 : i32
    %c16_i32_10 = arith.constant 16 : i32
    %19 = arith.addi %c0_i32_9, %c16_i32_10 : i32
    %c1_i32_11 = arith.constant 1 : i32
    %20 = scf.for %arg6 = %c0_i32_9 to %19 step %c1_i32_11 iter_args(%arg7 = %cst_8) -> (f32)  : i32 {
      %30 = arith.index_cast %arg6 : i32 to index
      %c0_19 = arith.constant 0 : index
      %c0_20 = arith.constant 0 : index
      %31 = vector.load %arg5[%30, %c0_19, %c0_20] : memref<16x16x16xf32, #tpu.memory_space<vmem>>, vector<1x16x16xf32>
      %32 = vector.shape_cast %31 : vector<1x16x16xf32> to vector<16x16xf32>
      %33 = vector.broadcast %18 : f32 to vector<16x16xf32>
      %34 = arith.subf %32, %33 : vector<16x16xf32>
      %35 = arith.mulf %34, %34 : vector<16x16xf32>
      %36 = vector.shape_cast %35 : vector<16x16xf32> to vector<1x16x16xf32>
      %cst_21 = arith.constant dense<0.000000e+00> : vector<1xf32>
      %37 = vector.multi_reduction <add>, %36, %cst_21 [1, 2] : vector<1x16x16xf32> to vector<1xf32>
      %38 = vector.shape_cast %37 : vector<1xf32> to vector<1x1x1xf32>
      %39 = vector.extract %38[0, 0, 0] : f32 from vector<1x1x1xf32>
      %40 = arith.addf %arg7, %39 : f32
      scf.yield %40 : f32
    }
    %c16_i32_12 = arith.constant 16 : i32
    %cst_13 = arith.constant 2.44140625E-4 : f32
    %21 = arith.mulf %20, %cst_13 : f32
    %cst_14 = arith.constant 9.99999974E-6 : f32
    %22 = arith.addf %21, %cst_14 : f32
    %23 = math.rsqrt %22 : f32
    %24 = vector.broadcast %23 : f32 to vector<16x1xf32>
    %25 = arith.mulf %2, %24 : vector<16x1xf32>
    %26 = vector.broadcast %18 : f32 to vector<16x1xf32>
    %27 = arith.mulf %26, %25 : vector<16x1xf32>
    %28 = arith.subf %3, %27 : vector<16x1xf32>
    %c0_i32_15 = arith.constant 0 : i32
    %c16_i32_16 = arith.constant 16 : i32
    %29 = arith.addi %c0_i32_15, %c16_i32_16 : i32
    %c1_i32_17 = arith.constant 1 : i32
    scf.for %arg6 = %c0_i32_15 to %29 step %c1_i32_17  : i32 {
      %30 = arith.index_cast %arg6 : i32 to index
      %c0_19 = arith.constant 0 : index
      %c0_20 = arith.constant 0 : index
      %31 = vector.load %arg5[%30, %c0_19, %c0_20] : memref<16x16x16xf32, #tpu.memory_space<vmem>>, vector<1x16x16xf32>
      %32 = vector.shape_cast %31 : vector<1x16x16xf32> to vector<16x16xf32>
      %33 = vector.broadcast %25 : vector<16x1xf32> to vector<16x16xf32>
      %34 = arith.mulf %32, %33 : vector<16x16xf32>
      %35 = vector.broadcast %28 : vector<16x1xf32> to vector<16x16xf32>
      %36 = arith.addf %34, %35 : vector<16x16xf32>
      %37 = vector.extract_strided_slice %36 {offsets = [0, 0], sizes = [4, 16], strides = [1, 1]} : vector<16x16xf32> to vector<4x16xf32>
      %38 = vector.extract_strided_slice %36 {offsets = [4, 0], sizes = [4, 16], strides = [1, 1]} : vector<16x16xf32> to vector<4x16xf32>
      %cst_21 = arith.constant dense<0.000000e+00> : vector<4x32xf32>
      %39 = tpu.matmul %37, %10, %cst_21 {dimension_numbers = #tpu.dot_dimension_numbers<[1], [0], [0], [1], [0, 0, 1, 1], [], []>, precision = #tpu.contract_precision<fp32>} : vector<4x16xf32>, vector<16x32xf32>, vector<4x32xf32> -> vector<4x32xf32>
      %cst_22 = arith.constant dense<0.000000e+00> : vector<4x32xf32>
      %40 = tpu.matmul %38, %15, %cst_22 {dimension_numbers = #tpu.dot_dimension_numbers<[1], [0], [0], [1], [0, 0, 1, 1], [], []>, precision = #tpu.contract_precision<fp32>} : vector<4x16xf32>, vector<16x32xf32>, vector<4x32xf32> -> vector<4x32xf32>
      %41 = arith.addf %39, %40 : vector<4x32xf32>
      %c2_i32_23 = arith.constant 2 : i32
      %42 = arith.muli %c2_i32_23, %arg6 : i32
      %c0_24 = arith.constant 0 : index
      %c0_25 = arith.constant 0 : index
      %43 = arith.index_cast %42 : i32 to index
      %c0_26 = arith.constant 0 : index
      %44 = vector.load %arg4[%c0_24, %c0_25, %43, %c0_26] : memref<1x4x32x32xf32, #tpu.memory_space<vmem>>, vector<1x4x1x32xf32>
      %45 = vector.shape_cast %44 : vector<1x4x1x32xf32> to vector<4x32xf32>
      %46 = vector.shape_cast %41 : vector<4x32xf32> to vector<1x4x1x32xf32>
      tpu.vector_store %arg4[%c0_24, %c0_25, %43, %c0_26], %46 {strides = array<i32>} : memref<1x4x32x32xf32, #tpu.memory_space<vmem>>, vector<1x4x1x32xf32>,
      %47 = vector.extract_strided_slice %36 {offsets = [8, 0], sizes = [4, 16], strides = [1, 1]} : vector<16x16xf32> to vector<4x16xf32>
      %48 = vector.extract_strided_slice %36 {offsets = [12, 0], sizes = [4, 16], strides = [1, 1]} : vector<16x16xf32> to vector<4x16xf32>
      %cst_27 = arith.constant dense<0.000000e+00> : vector<4x32xf32>
      %49 = tpu.matmul %47, %10, %cst_27 {dimension_numbers = #tpu.dot_dimension_numbers<[1], [0], [0], [1], [0, 0, 1, 1], [], []>, precision = #tpu.contract_precision<fp32>} : vector<4x16xf32>, vector<16x32xf32>, vector<4x32xf32> -> vector<4x32xf32>
      %cst_28 = arith.constant dense<0.000000e+00> : vector<4x32xf32>
      %50 = tpu.matmul %48, %15, %cst_28 {dimension_numbers = #tpu.dot_dimension_numbers<[1], [0], [0], [1], [0, 0, 1, 1], [], []>, precision = #tpu.contract_precision<fp32>} : vector<4x16xf32>, vector<16x32xf32>, vector<4x32xf32> -> vector<4x32xf32>
      %51 = arith.addf %49, %50 : vector<4x32xf32>
      %c2_i32_29 = arith.constant 2 : i32
      %52 = arith.muli %c2_i32_29, %arg6 : i32
      %c1_i32_30 = arith.constant 1 : i32
      %53 = arith.addi %52, %c1_i32_30 : i32
      %c0_31 = arith.constant 0 : index
      %c0_32 = arith.constant 0 : index
      %54 = arith.index_cast %53 : i32 to index
      %c0_33 = arith.constant 0 : index
      %55 = vector.load %arg4[%c0_31, %c0_32, %54, %c0_33] : memref<1x4x32x32xf32, #tpu.memory_space<vmem>>, vector<1x4x1x32xf32>
      %56 = vector.shape_cast %55 : vector<1x4x1x32xf32> to vector<4x32xf32>
      %57 = vector.shape_cast %51 : vector<4x32xf32> to vector<1x4x1x32xf32>
      tpu.vector_store %arg4[%c0_31, %c0_32, %54, %c0_33], %57 {strides = array<i32>} : memref<1x4x32x32xf32, #tpu.memory_space<vmem>>, vector<1x4x1x32xf32>,
    }
    %c16_i32_18 = arith.constant 16 : i32
    return
  }
  func.func @transform_0(%arg0: i32) -> (i32, i32, i32, i32) {
    %c0_i32 = arith.constant 0 : i32
    %c0_i32_0 = arith.constant 0 : i32
    %c0_i32_1 = arith.constant 0 : i32
    %c0_i32_2 = arith.constant 0 : i32
    return %arg0, %c0_i32, %c0_i32_0, %c0_i32_1 : i32, i32, i32, i32
  }
  func.func @transform_1(%arg0: i32) -> (i32, i32) {
    %c0_i32 = arith.constant 0 : i32
    %c0_i32_0 = arith.constant 0 : i32
    %c0_i32_1 = arith.constant 0 : i32
    return %c0_i32, %c0_i32_0 : i32, i32
  }
  func.func @transform_2(%arg0: i32) -> (i32, i32) {
    %c0_i32 = arith.constant 0 : i32
    %c0_i32_0 = arith.constant 0 : i32
    %c0_i32_1 = arith.constant 0 : i32
    return %c0_i32, %c0_i32_0 : i32, i32
  }
  func.func @transform_3(%arg0: i32) -> (i32, i32, i32, i32) {
    %c0_i32 = arith.constant 0 : i32
    %c0_i32_0 = arith.constant 0 : i32
    %c0_i32_1 = arith.constant 0 : i32
    %c0_i32_2 = arith.constant 0 : i32
    return %arg0, %c0_i32, %c0_i32_0, %c0_i32_1 : i32, i32, i32, i32
  }
}

</mosaic_0001>

<bundles_post_ra>
// kernel: tpu_custom_call.1
= control target key start
LH: loop header
LB: loop body
LE: loop exit
PB: predicated region body
PF: predicated region fallthrough
CT: control target
= control target key end

     0   :  { %8 = vsyncpa [#allocation4], 0  ;;  %s4089_s0 = inlined_call_operand.hbm [shape: f32[2,4,16,16], index: 0, kind: input, shape index: {}]   ;;  %s4090_s1 = inlined_call_operand.vmem [shape: f32[16,4], index: 1, kind: input, shape index: {}]   ;;  %s4091_s2 = inlined_call_operand.vmem [shape: f32[16,3], index: 2, kind: input, shape index: {}]   ;;  %s4092_s3 = inlined_call_operand.hbm [shape: f32[2,4,32,32], index: 3, kind: output, shape index: {}]  }
   0x1   :  { %10 = vsyncpa [#allocation4 + $0x1], 0 }
   0x2   :  { %11 = vsyncpa [#allocation5], 0 }
   0x3   :  { %13 = vsyncpa [#allocation5 + $0x1], 0  ;;  %s3516_s12 = smov 0   ;;  %s3518_s13 = smov 0  }
   0x4   :  { %s3520_s14 = smov 0   ;;  %s3522_s15 = smov 0  }
   0x5 LB: > { %s3537_s16 = sadd.s32 4294967295, %s3459_s15   ;;  %s2894_s17 = sadd.s32 4294967294, %s3459_s15   ;;  %s3459_s15 = sphi %s3522_s15, %s4118_s15   ;;  %s3455_s14 = sphi %s3520_s14, %s4117_s14   ;;  %s3451_s13 = sphi %s3518_s13, %s4116_s13   ;;  %s3447_s12 = sphi %s3516_s12, %s4115_s12  }
   0x6   : > { %s3541_s18 = sadd.s32 1, %s3459_s15   ;;  %s26_s19 = sadd.s32 1, %s3455_s14 }
   0x7   : > { %s23_s20 = ssub.s32 %s3459_s15, %s3541_s18  ;;  %p33_p0 = scmp.ne.s32.totalorder %s3455_s14, %s3451_s13 }
   0x8   : > { %p24_p1 = scmp.eq.s32.totalorder %s23_s20, 0  ;;  %p34_p2 = scmp.eq.s32.totalorder %s3459_s15, 0 }
   0x9   : > { %p39_p3 = scmp.ne.s32.totalorder %s3451_s13, %s3447_s12  ;;  %p40_p4 = scmp.eq.s32.totalorder %s3537_s16, 0 }
   0xa   : > { %s3553_s21 = scalar_select %p24_p1, %s3455_s14, %s26_s19  }
   0xb   : > { %p3555_p5 = por %p34_p2, %p33_p0  ;;  %p3559_p6 = por %p40_p4, %p39_p3 }
   0xc   : > { %p105_p7 = scmp.eq.s32.totalorder %s3537_s16, 1  ;;  %p111_p8 = scmp.eq.s32.totalorder %s2894_s17, 1 }
   0xd   : > { %s4096_s23 = scalar_select %p3559_p6, 1, 0 }
   0xe   : > { %p3253_p10 = scmp.lt.s32.totalorder %s3459_s15, 2  ;;  %p3566_p11 = por %p105_p7, %p33_p0 }
   0xf   : > { %p3570_p12 = por %p111_p8, %p39_p3  ;;  %s137_s26 = sand.u32 1, %s3455_s14  }
  0x10   : > { %s4097_s24 = scalar_select %p3566_p11, 1, 0 }
  0x11   : > { %s4098_s25 = scalar_select %p3570_p12, 1, 0 }
  0x12   : > { %s2945_s27 = sshll.u32 %s3459_s15, 10  ;;  %s2897_s28 = sshll.u32 %s137_s26, 6 }
  0x13   : > { %s3579_s4 = scalar_lea.hbm %s4089_s0, %s2945_s27  ;;  %s141_s5 = scalar_lea.vmem [#allocation3], %s2897_s28 }
  0x14   : > { %s148_s6 = sshll.u32 %s141_s5, 4  ;;  %p3583_p13 = pnand %p3253_p10, %p3555_p5  ;;  %s3587_s6 = int_to_ptr.vmem [resolvable:$true] %s148_s6 }
  0x15   : > { %s3589_s8 = scalar_lea.sflag [#allocation4], %s137_s26  ;;  %s3347_s9 = scalar_lea.hbm %s3579_s4, 1024 }
  0x16   : > { %p3348_p0 = scmp.ne.s32.totalorder %s3579_s4, %s3347_s9  ;;  %p3349_p1 = pneg %p3583_p13 }
  0x17   : > { %s3352_s17 = scalar_lea.hbm %s4089_s0, 2048  ;;  %p3353_p4 = scmp.lt.s32.totalorder %s3579_s4, %s4089_s0 }
  0x18   : > { %p3350_p2 = pnand %p3349_p1, %p3348_p0  ;;  %p3354_p5 = scmp.lt.s32.totalorder %s3352_s17, %s3347_s9 }
  0x1a   : > { %p3351_p3 = pneg %p3350_p2  ;;  %p3355_p7 = por %p3354_p5, %p3353_p4 }
  0x1c   : > { %p3356_p8 = pnand %p3355_p7, %p3351_p3 }
  0x1e   : > { %3359 = shalt.err (!%p3356_p8)
}
  0x1f   : > { %s3360_s22 = scalar_lea.vmem %s3587_s6, 1024  ;;  %s3481_s26 = smov [#allocation3]  }
  0x20   : > { %p3361_p10 = scmp.ne.s32.totalorder %s3587_s6, %s3360_s22  ;;  %s3365_s27 = sshll.u32 %s3481_s26, 4  ;;  %s3366_s27 = int_to_ptr.vmem [resolvable:$false] %s3365_s27 }
  0x21   : > { %s3367_s28 = scalar_lea.vmem %s3366_s27, 2048  ;;  %p3368_p2 = scmp.lt.s32.totalorder %s3587_s6, %s3366_s27 }
  0x22   : > { %p3363_p9 = pnand %p3361_p10, %p3349_p1  ;;  %p3369_p12 = scmp.lt.s32.totalorder %s3367_s28, %s3360_s22 }
  0x24   : > { %p3364_p0 = pneg %p3363_p9  ;;  %p3370_p11 = por %p3369_p12, %p3368_p2 }
  0x26   : > { %p3371_p6 = pnand %p3370_p11, %p3364_p0 }
  0x28   : > { %3374 = shalt.err (!%p3371_p6)
}
  0x29   : > { %s3482_s29 = smov 128   ;;  %s3483_s30 = smov 8  }
  0x2a   : > { %3248 = dma.hbm_to_vmem [thread:$0]  (!%p3583_p13), %s3579_s4, 1024, %s3587_s6, %s3589_s8, %s3482_s29, %s3482_s29, %s3483_s30  }
  0x2b   : > { %p2900_p9 = scmp.ge.s32.totalorder %s3459_s15, 1  ;;  %p156_p1 = scmp.lt.s32.totalorder %s3459_s15, 3 }
  0x2d   : > { %p157_p3 = pnand %p2900_p9, %p156_p1 }
  0x2e   : > { %s3613_s5 = sand.u32 (!%p157_p3), 1, %s3451_s13   ;;  %p4100_p6 = scmp.ne.s32.totalorder (!%p157_p3), %s4096_s23, 0 }
  0x2f   : > { %160 = sbr.rel (%p157_p3) target bundleno = 1332 (0x534), region = 32  ;;  %s2901_s9 = sshll.u32 (!%p157_p3), %s3613_s5, 6 }
  0x30   : > { %s163_s10 = scalar_lea.sflag (!%p157_p3), [#allocation4], %s3613_s5  ;;  %s3617_s11 = scalar_lea.vmem (!%p157_p3), [#allocation3], %s2901_s9 }
  0x34   : > { %3438 = dma.done.wait (%p4100_p6), %s163_s10, 1024  }
  0x35   : > { %3440 = vsyncadd (%p4100_p6), %s163_s10, 4294966272  ;;  %s2902_s4 = sshll.u32 %s3613_s5, 7  ;;  %v193_v0 = vlaneseq  ;;  %v3635_v8 = vld [vmem:[%s4090_s1] sm:$0xff]  ;;  %v3640_v9 = vld [vmem:[%s4090_s1 + $0x8] sm:$0xff]  ;;  %v3484_v11 = vmov 0.0   ;;  %s3682_s27 = smov 0.0  }
  0x36   : > { %v3645_v10 = vld [vmem:[%s4091_s2] sm:$0xff]  ;;  %v3654_v13 = vld [vmem:[%s4091_s2 + $0x8] sm:$0xff]  ;;  %s3680_s26 = scalar_lea.vmem [#allocation6], %s2902_s4  ;;  %s3684_s28 = smov 0  }
  0x37   : > { %v194_v1 = vand.u32 127, %v193_v0  ;;  %v3624_v2 = vshrl.u32 %v193_v0, 7 }
  0x39   : > { %v197_v3 = vadd.s32 8, %v3624_v2  ;;  %v198_v4 = vmul.u32 2, %v3624_v2 }
  0x3b   : > { %v199_v5 = vmul.u32 2, %v197_v3  ;;  %vm3628_vm0 = vcmp.eq.s32.totalorder %v194_v1, %v198_v4  ;;  %v206_v7 = vadd.s32 1, %v198_v4 }
  0x3c   : > { %v3649_v12 = vsel %vm3628_vm0, 1.0, %v3484_v11 }
  0x3d   : > { %vm3656_vm1 = vcmp.eq.s32.totalorder %v194_v1, %v199_v5  ;;  %v207_v15 = vadd.s32 1, %v199_v5  ;;  %vm3660_vm2 = vcmp.eq.s32.totalorder %v194_v1, %v206_v7 }
  0x3e   : > { %v3666_v17 = vsel %vm3656_vm1, 1.0, %v3484_v11  ;;  %v3670_v18 = vsel %vm3660_vm2, 1.0, %v3484_v11 }
  0x3f   : > { %vm3672_vm3 = vcmp.eq.s32.totalorder %v194_v1, %v207_v15 }
  0x40   : > { %v3678_v20 = vsel %vm3672_vm3, 1.0, %v3484_v11 }
  0x41 LB: >> { %vm249_vm4 = vcmask 31744   ;;  %s221_s29 = scalar_lea.vmem %s3617_s11, %s3467_s28 [#allocation3]  ;;  %vm241_vm5 = vcmask 1041409   ;;  %vm244_vm6 = vcmask 1042434   ;;  %v3485_v23 = vmov 0   ;;  %s2907_s30 = sshll.u32 %s3467_s28, 4  ;;  %s3467_s28 = sphi %s3684_s28, %s219_s28   ;;  %s3463_s27 = sphi %s3682_s27, %s4110_s27  }
  0x42   : >> { %v251_v21 = vsel %vm249_vm4, %v3635_v8, 0  ;;  %v254_v22 = vsel %vm249_vm4, %v3640_v9, 0  ;;  %3340 = vset.pattern.permute.xlu0 %v3485_v23  ;;  %v222_v24 = vld [vmem:[%s221_s29] sm:$0x1]  ;;  %v223_v25 = vld [vmem:[%s221_s29 + $0x10] sm:$0x1] }
  0x43   : >> { %v224_v26 = vld [vmem:[%s221_s29 + $0x20] sm:$0x1]  ;;  %228 = vperm.xlu0 %3340, %v3645_v10   ;;  %v225_v27 = vld [vmem:[%s221_s29 + $0x30] sm:$0x1]  ;;  %v240_v28 = vrot.slane %v223_v25, 7  ;;  %v325_v30 = vand.u32 4294901760, %v251_v21 }
  0x44   : >> { %v243_v29 = vrot.slane %v224_v26, 6  ;;  %v335_v31 = vand.u32 4294901760, %v254_v22  ;;  %v246_v32 = vrot.slane %v225_v27, 5  ;;  %vm247_vm7 = vcmask 1043459   ;;  %s751_s9 = scalar_lea.vmem [#allocation2], %s2907_s30  ;;  %s219_s28 = sadd.s32 1, %s3467_s28  }
  0x45   : >> { %v242_v33 = vsel %vm241_vm5, %v240_v28, %v222_v24  ;;  %vm256_vm8 = vcmask 1043456   ;;  %v326_v34 = vsub.f32 %v251_v21, %v325_v30  ;;  %3044 = vmatprep.mubr.f32.mxu1 %v325_v30  ;;  %vm752_vm9 = vcmask 130048   ;;  %p216_p11 = scmp.ge.s32.totalorder %s219_s28, 16  }
  0x46   : >> { %v336_v35 = vsub.f32 %v254_v22, %v335_v31  ;;  %v245_v36 = vsel %vm244_vm6, %v243_v29, %v242_v33  ;;  %s3715_s7 = smov (%p216_p11), 0.0   ;;  %s3717_s23 = smov (%p216_p11), 0  }
  0x47   : >> { %233 = vperm.xlu0 %3340, %v3654_v13   ;;  %v248_v37 = vsel %vm247_vm7, %v246_v32, %v245_v36  ;;  %v327_v38 = vand.u32 4294901760, %v326_v34 }
  0x48   : >> { %v337_v39 = vand.u32 4294901760, %v336_v35  ;;  %v257_v40 = vsel %vm256_vm8, %v248_v37, 0 }
  0x49   : >> { %v290_v41 = vand.u32 4294901760, %v257_v40  ;;  %v328_v42 = vsub.f32 %v326_v34, %v327_v38 }
  0x4a   : >> { %v338_v43 = vsub.f32 %v336_v35, %v337_v39 }
  0x4b   : >> { %3037 = vmatprep.subr.mxu0 %v290_v41  ;;  %v329_v44 = vand.u32 4294901760, %v328_v42  ;;  %v377_v46 = vsub.f32 %v257_v40, %v290_v41 }
  0x4c   : >> { %v339_v45 = vand.u32 4294901760, %v338_v43  ;;  %3038 = vmatpush3.msra.mxu0 %v290_v41 }
  0x4d   : >> { %3039 = vmatprep.mubr.f32.mxu0 %v329_v44  ;;  %v378_v47 = vand.u32 4294901760, %v377_v46  ;;  %3047 = vmatprep.subr.mxu0 %v377_v46 }
  0x4e   : >> { %3040 = vmatmul.mubr.f32.vlgmr.msra.gmra.mxu0 %v339_v45 }
  0x4f   : >> { %v379_v48 = vsub.f32 %v377_v46, %v378_v47  ;;  %3048 = vmatpush3.msra.mxu0 %v377_v46  ;;  %3049 = vmatprep.mubr.f32.mxu0 %v326_v34 }
  0x50   : >> { %3057 = vmatprep.subr.mxu0 %v378_v47 }
  0x51   : >> { %v380_v49 = vand.u32 4294901760, %v379_v48 }
  0x52   : >> { %3050 = vmatmul.mubr.f32.vlgmr.msra.gmra.mxu0 %v336_v35 }
  0x53   : >> { %3042 = vmatprep.subr.mxu1 %v380_v49  ;;  %3058 = vmatpush3.msra.mxu0 %v378_v47 }
  0x54   : >> { %3043 = vmatpush3.msra.mxu1 %v380_v49  ;;  %3059 = vmatprep.mubr.f32.mxu0 %v325_v30 }
  0x55   : >> { %3045 = vmatmul.mubr.f32.vlgmr.msra.gmra.mxu1 %v335_v31  ;;  %3052 = vmatprep.subr.mxu1 %v290_v41 }
  0x56   : >> { %3053 = vmatpush3.msra.mxu1 %v290_v41  ;;  %3054 = vmatprep.mubr.f32.mxu1 %v327_v38 }
  0x57   : >> { %3062 = vmatprep.subr.mxu1 %v290_v41  ;;  %3060 = vmatmul.mubr.f32.vlgmr.msra.gmra.mxu0 %v335_v31 }
  0x59   : >> { %3055 = vmatmul.mubr.f32.vlgmr.msra.gmra.mxu1 %v337_v39 }
  0x5a   : >> { %3063 = vmatpush3.msra.mxu1 %v290_v41  ;;  %3064 = vmatprep.mubr.f32.mxu1 %v325_v30 }
  0x5d   : >> { %3065 = vmatmul.mubr.f32.vlgmr.msra.gmra.mxu1 %v335_v31 }
  0xbe   : >> { %v229_v50 = vpop.permute.xlu0 %228 }
  0xc2   : >> { %v234_v53 = vpop.permute.xlu0 %233 }
 0x10e   : >> { %v3041_v51 = vpop.f32.mrf.mxu0 }
 0x10f   : >> { %v342_v55 = vadd.f32 %v3041_v51, %v234_v53 }
 0x110   : >> { %v331_v52 = vpop.f32.mrf.mxu0 }
 0x111   : >> { %v332_v58 = vadd.f32 %v331_v52, %v229_v50 }
 0x112   : >> { %v3051_v54 = vpop.f32.mrf.mxu0 }
 0x114   : >> { %v497_v57 = vpop.f32.mrf.mxu0 }
 0x115   : >> { %v3046_v56 = vpop.f32.mrf.mxu1 }
 0x116   : >> { %v424_v59 = vadd.f32 %v3046_v56, %v342_v55 }
 0x117   : >> { %v417_v60 = vpop.f32.mrf.mxu1  ;;  %v3061_v0 = vpop.f32.mrf.mxu0 }
 0x118   : >> { %v505_v61 = vadd.f32 %v3051_v54, %v424_v59  ;;  %v418_v62 = vadd.f32 %v417_v60, %v332_v58 }
 0x119   : >> { %v3056_v63 = vpop.f32.mrf.mxu1  ;;  %v660_v11 = vpop.f32.mrf.mxu0 }
 0x11a   : >> { %v498_v1 = vadd.f32 %v497_v57, %v418_v62  ;;  %v587_v3 = vadd.f32 %v3056_v63, %v505_v61 }
 0x11b   : >> { %v578_v4 = vpop.f32.mrf.mxu1 }
 0x11c   : >> { %v667_v5 = vadd.f32 %v3061_v0, %v587_v3  ;;  %v579_v7 = vadd.f32 %v578_v4, %v498_v1 }
 0x11d   : >> { %v3066_v15 = vpop.f32.mrf.mxu1 }
 0x11e   : >> { %v661_v21 = vadd.f32 %v660_v11, %v579_v7  ;;  %v745_v22 = vadd.f32 %v3066_v15, %v667_v5 }
 0x11f   : >> { %v738_v23 = vpop.f32.mrf.mxu1 }
 0x120   : >> { %v749_v24 = vmax.f32 %v745_v22, 0.0  ;;  %v739_v25 = vadd.f32 %v738_v23, %v661_v21 }
 0x122   : >> { %v748_v26 = vmax.f32 %v739_v25, 0.0  ;;  %754 = vst.msk [vmem:[%s751_s9 + $0x8] sm:$0xff] %vm752_vm9, %v749_v24  ;;  %v756_v28 = vsel %vm752_vm9, %v749_v24, 0.0 }
 0x124   : >> { %v755_v27 = vsel %vm752_vm9, %v748_v26, 0.0  ;;  %753 = vst.msk [vmem:[%s751_s9] sm:$0xff] %vm752_vm9, %v748_v26 }
 0x125   : >> { %v757_v29 = vadd.f32 %v756_v28, %v755_v27 }
 0x127   : >> { %758 = vadd.xlane.f32.xlu1 %v757_v29 }
 0x1b0   : >> { %v759_v30 = vpop.xlane.xlu1 %758 }
 0x1b1   : >> { %v760_v31 = vrot.slane %v759_v30, 4 }
 0x1b3   : >> { %v761_v32 = vadd.f32 %v760_v31, %v759_v30 }
 0x1b5   : >> { %v762_v33 = vrot.slane %v761_v32, 2 }
 0x1b7   : >> { %v763_v34 = vadd.f32 %v762_v33, %v761_v32 }
 0x1b9   : >> { %v764_v35 = vrot.slane %v763_v34, 1 }
 0x1bb   : >> { %v765_v36 = vadd.f32 %v764_v35, %v763_v34 }
 0x1bd   : >> { %3235 = vpush %v765_v36 }
 0x1ee   : >> { %s3236_s10 = spop %3235  ;;  %218 = sbr.rel (!%p216_p11) target bundleno = 65 (0x41), region = 104 }
 0x1ef   : >> { %s3706_s27 = sadd.f32 %s3463_s27, %s3236_s10  }
 0x1f1   : >> { %s4109_s4 = smov %s3706_s27 }
 0x1f2   : >> { %s4110_s27 = smov %s4109_s4  ;;  %s768_s6 = smul.f32 (%p216_p11), 0.00024414063, %s4109_s4 }
 0x1f3 LB: >> { %s2908_s8 = sshll.u32 %s3475_s23, 4  ;;  %s774_s23 = sadd.s32 1, %s3475_s23   ;;  %s3475_s23 = sphi %s3717_s23, %s774_s23   ;;  %s3471_s7 = sphi %s3715_s7, %s4111_s7  }
 0x1f4   : >> { %v780_v37 = vstv %s768_s6  ;;  %s777_s17 = scalar_lea.vmem [#allocation2], %s2908_s8  ;;  %p771_p12 = scmp.ge.s32.totalorder %s774_s23, 16  }
 0x1f5   : >> { %v778_v38 = vld [vmem:[%s777_s17] sm:$0xff]  ;;  %v779_v39 = vld [vmem:[%s777_s17 + $0x8] sm:$0xff]  ;;  %s3486_s28 = smov (%p771_p12), 1   ;;  %s3745_s29 = smov (%p771_p12), 0  }
 0x1f6   : >> { %v781_v40 = vsub.f32 %v778_v38, %v780_v37  ;;  %v782_v8 = vsub.f32 %v779_v39, %v780_v37 }
 0x1f8   : >> { %v783_v9 = vmul.f32 %v781_v40, %v781_v40  ;;  %v784_v41 = vmul.f32 %v782_v8, %v782_v8 }
 0x1fa   : >> { %v786_v42 = vsel %vm752_vm9, %v783_v9, 0.0  ;;  %v787_v43 = vsel %vm752_vm9, %v784_v41, 0.0 }
 0x1fb   : >> { %v788_v44 = vadd.f32 %v787_v43, %v786_v42 }
 0x1fd   : >> { %789 = vadd.xlane.f32.xlu0 %v788_v44 }
 0x286   : >> { %v790_v45 = vpop.xlane.xlu0 %789 }
 0x287   : >> { %v791_v46 = vrot.slane %v790_v45, 4 }
 0x289   : >> { %v792_v47 = vadd.f32 %v791_v46, %v790_v45 }
 0x28b   : >> { %v793_v48 = vrot.slane %v792_v47, 2 }
 0x28d   : >> { %v794_v49 = vadd.f32 %v793_v48, %v792_v47 }
 0x28f   : >> { %v795_v50 = vrot.slane %v794_v49, 1 }
 0x291   : >> { %v796_v51 = vadd.f32 %v795_v50, %v794_v49 }
 0x293   : >> { %3237 = vpush %v796_v51 }
 0x2c3   : > { %773 = sbr.rel (!%p771_p12) target bundleno = 499 (0x1f3), region = 115 }
 0x2c4   : >> { %s3238_s11 = spop %3237 }
 0x2c5   : >> { %s798_s19 = sadd.f32 %s3471_s7, %s3238_s11  }
 0x2c7   : >> { %s4111_s7 = smov %s798_s19  ;;  %s799_s20 = smul.f32 (%p771_p12), 0.00024414063, %s798_s19 }
 0x2c9   : > { %s800_s22 = sadd.f32 1e-05, %s799_s20 }
 0x2cb   : > { %v801_v52 = vstv %s800_s22 }
 0x2cc   : > { %3341 = vrsqrt.f32 %v801_v52 }
 0x2d9   : > { %v3342_v53 = vpop.eup %3341 }
 0x2da   : > { %3239 = vpush %v3342_v53 }
 0x30b   : > { %s3240_s27 = spop %3239 }
 0x30c   : > { %v804_v54 = vstv %s3240_s27 }
 0x30d   : > { %v3730_v55 = vmul.f32 %v804_v54, %v3645_v10  ;;  %v3733_v56 = vmul.f32 %v804_v54, %v3654_v13 }
 0x30f   : > { %v808_v57 = vmul.f32 %v3730_v55, %v780_v37  ;;  %v809_v58 = vmul.f32 %v3733_v56, %v780_v37 }
 0x311   : > { %812 = vrot.lane.b32.xlu0 %v808_v57, %s3486_s28 }
 0x315   : > { %814 = vrot.lane.b32.xlu0 %v809_v58, %s3486_s28 }
 0x383   : > { %v3737_v59 = vpop.permute.xlu0 %812 }
 0x384   : > { %v818_v60 = vsub.f32 %v3645_v10, %v3737_v59 }
 0x387   : > { %v3741_v61 = vpop.permute.xlu0 %814 }
 0x388   : > { %v819_v62 = vsub.f32 %v3654_v13, %v3741_v61 }
 0x389 LB: >> { %v3752_v63 = vsub.f32 %v3678_v20, %v3678_v20  ;;  %v3487_v0 = vmov 1   ;;  %v3756_v1 = vsub.f32 %v3670_v18, %v3670_v18  ;;  %v3488_v11 = vmov 2   ;;  %s2909_s30 = sshll.u32 %s3479_s29, 4  ;;  %s2922_s10 = sshll.u32 %s3479_s29, 1  ;;  %s3479_s29 = sphi %s3745_s29, %s825_s29  }
 0x38a   : >> { %3343 = vset.pattern.permute.xlu0 %v3487_v0  ;;  %3345 = vset.pattern.permute.xlu1 %v3487_v0  ;;  %v3489_v22 = vmov 0.0   ;;  %vm3490_vm10 = vmmov 0   ;;  %v3491_v23 = vmov 1.0   ;;  %s3799_s9 = scalar_lea.vmem [#allocation2], %s2909_s30  ;;  %v3804_v29 = vsub.f32 %v3666_v17, %v3666_v17  ;;  %s4018_s4 = scalar_lea.vmem %s3680_s26, %s2922_s10 [#allocation6] }
 0x38b   : >> { %832 = vperm.xlu0 %3343, %v3730_v55   ;;  %837 = vperm.xlu1 %3345, %v3733_v56   ;;  %v3761_v3 = vand.u32 4294901760, %v3752_v63  ;;  %v3764_v4 = vand.u32 4294901760, %v3756_v1  ;;  %v828_v25 = vld [vmem:[%s3799_s9] sm:$0xff]  ;;  %v3809_v32 = vsub.f32 %v3649_v12, %v3649_v12  ;;  %v829_v44 = vld [vmem:[%s3799_s9 + $0x8] sm:$0xff]  ;;  %vm1810_vm11 = vcmask 253952   ;;  %s825_s29 = sadd.s32 1, %s3479_s29  }
 0x38c   : >> { %3074 = vmatprep.subr.mxu1 %v3489_v22  ;;  %3067 = vmatprep.subr.mxu0 %v3489_v22  ;;  %v3812_v34 = vand.u32 4294901760, %v3804_v29  ;;  %p822_p13 = scmp.ge.s32.totalorder %s825_s29, 16  }
 0x38d   : >> { %v968_v5 = vsub.f32 %v3752_v63, %v3761_v3  ;;  %v975_v7 = vsub.f32 %v3756_v1, %v3764_v4  ;;  %3078 = vmatprep.mubr.msk.f32.mxu1 %vm3490_vm10, %v3489_v22  ;;  %3071 = vmatprep.mubr.msk.f32.mxu0 %vm3490_vm10, %v3489_v22  ;;  %v3820_v36 = vand.u32 4294901760, %v3809_v32  ;;  %s2946_s6 = sshll.u32 (%p822_p13), %s3537_s16, 11  ;;  %s2788_s17 = sshll.u32 (%p822_p13), %s3680_s26, 4  ;;  %s4046_s17 = int_to_ptr.vmem [resolvable:$true] %s2788_s17 }
 0x38e   : >> { %3068 = vmatpush3.msk.msra.mxu0 %vm3672_vm3, %v3491_v23  ;;  %v1429_v38 = vsub.f32 %v3804_v29, %v3812_v34  ;;  %s4043_s8 = scalar_lea.hbm (%p822_p13), %s4092_s3, %s2946_s6  ;;  %s2775_s11 = scalar_lea.sflag (%p822_p13), [#allocation5], %s3613_s5 }
 0x38f   : >> { %3344 = vset.pattern.permute.xlu0 %v3488_v11  ;;  %3346 = vset.pattern.permute.xlu1 %v3488_v11  ;;  %v3770_v15 = vand.u32 4294901760, %v968_v5  ;;  %v3778_v21 = vand.u32 4294901760, %v975_v7  ;;  %v1436_v8 = vsub.f32 %v3809_v32, %v3820_v36  ;;  %s3375_s19 = scalar_lea.vmem (%p822_p13), %s4046_s17, 2048  ;;  %p4112_p5 = scmp.ne.s32.totalorder (%p822_p13), %s4097_s24, 0 }
 0x390   : >> { %844 = vperm.xlu0 %3344, %v818_v60   ;;  %849 = vperm.xlu1 %3346, %v819_v62   ;;  %v3838_v42 = vand.u32 4294901760, %v1429_v38  ;;  %p3376_p4 = scmp.ne.s32.totalorder (%p822_p13), %s4046_s17, %s3375_s19  ;;  %s3493_s20 = smov (%p822_p13), [#allocation6]  }
 0x391   : >> { %3075 = vmatpush3.msra.mxu1 %v3770_v15  ;;  %3069 = vmatprep.subr.mxu0 %v3489_v22  ;;  %v3848_v45 = vand.u32 4294901760, %v1436_v8  ;;  %s3379_s22 = sshll.u32 (%p822_p13), %s3493_s20, 4  ;;  %s3380_s22 = int_to_ptr.vmem [resolvable:$false] %s3379_s22 }
 0x392   : >> { %3076 = vmatprep.subr.mxu1 %v3489_v22  ;;  %3070 = vmatpush3.msk.msra.mxu0 %vm3660_vm2, %v3491_v23  ;;  %p3377_p7 = pnand (%p822_p13), %p3376_p4, %p4112_p5  ;;  %s3381_s16 = scalar_lea.vmem (%p822_p13), %s3380_s22, 4096 }
 0x393   : >> { %3077 = vmatpush3.msra.mxu1 %v3778_v21  ;;  %3081 = vmatprep.subr.mxu0 %v3489_v22  ;;  %p3382_p10 = scmp.lt.s32.totalorder (%p822_p13), %s4046_s17, %s3380_s22  ;;  %p3383_p0 = scmp.lt.s32.totalorder (%p822_p13), %s3381_s16, %s3375_s19 }
 0x394   : >> { %3088 = vmatprep.subr.mxu1 %v3489_v22  ;;  %p3378_p8 = pneg (%p822_p13), %p3377_p7 }
 0x395   : > { %p3384_p2 = por (%p822_p13), %p3383_p0, %p3382_p10 }
 0x397   : > { %p3385_p9 = pnand (%p822_p13), %p3384_p2, %p3378_p8 }
 0x406   : >> { %v833_v24 = vpop.permute.xlu0 %832  ;;  %v838_v9 = vpop.permute.xlu1 %837 }
 0x407   : >> { %v840_v26 = vmul.f32 %v833_v24, %v828_v25  ;;  %v841_v46 = vmul.f32 %v838_v9, %v829_v44 }
 0x40b   : >> { %v845_v27 = vpop.permute.xlu0 %844  ;;  %v850_v48 = vpop.permute.xlu1 %849 }
 0x40c   : >> { %v852_v28 = vadd.f32 %v845_v27, %v840_v26  ;;  %v853_v49 = vadd.f32 %v850_v48, %v841_v46  ;;  %v3492_v46 = vmov 1966171168  }
 0x40e   : >> { %v855_v30 = vrot.slane %v852_v28, 4  ;;  %v1318_v40 = vsel %vm752_vm9, %v852_v28, 0  ;;  %v1816_v51 = vrot.slane %v853_v49, 4  ;;  %v2278_v7 = vsel %vm752_vm9, %v853_v49, 0 }
 0x40f   : >> { %v3843_v43 = vand.u32 4294901760, %v1318_v40 }
 0x410   : >> { %v857_v31 = vsel %vm752_vm9, %v855_v30, 0  ;;  %v1817_v53 = vsel %vm752_vm9, %v1816_v51, 0 }
 0x411   : >> { %v926_v33 = vand.u32 4294901760, %v857_v31  ;;  %v1388_v47 = vsub.f32 %v1318_v40, %v3843_v43  ;;  %v3899_v57 = vand.u32 4294901760, %v1817_v53 }
 0x413   : >> { %v927_v35 = vsub.f32 %v857_v31, %v926_v33  ;;  %3079 = vmatmul.mubr.f32.vlgmr.msra.gmra.mxu1 %v926_v33  ;;  %v1389_v50 = vand.u32 4294901760, %v1388_v47  ;;  %v1887_v58 = vsub.f32 %v1817_v53, %v3899_v57 }
 0x414   : >> { %3089 = vmatpush3.msk.msra.mxu1 %vm3672_vm3, %v3491_v23  ;;  %3092 = vmatprep.mubr.msk.f32.mxu1 %vm3490_vm10, %v3489_v22 }
 0x415   : >> { %3090 = vmatprep.subr.mxu1 %v3489_v22  ;;  %v928_v37 = vand.u32 4294901760, %v927_v35  ;;  %v1390_v52 = vsub.f32 %v1388_v47, %v1389_v50  ;;  %v1888_v0 = vand.u32 4294901760, %v1887_v58 }
 0x416   : >> { %3091 = vmatpush3.msk.msra.mxu1 %vm3660_vm2, %v3491_v23 }
 0x417   : >> { %3093 = vmatmul.mubr.f32.vlgmr.msra.gmra.mxu1 %v928_v37  ;;  %3102 = vmatprep.subr.mxu1 %v3489_v22  ;;  %v929_v39 = vsub.f32 %v927_v35, %v928_v37  ;;  %v1391_v54 = vand.u32 4294901760, %v1390_v52  ;;  %v1889_v5 = vsub.f32 %v1887_v58, %v1888_v0 }
 0x418   : >> { %3103 = vmatpush3.msk.msra.mxu1 %vm3672_vm3, %v3491_v23  ;;  %3106 = vmatprep.mubr.msk.f32.mxu1 %vm3490_vm10, %v3489_v22 }
 0x419   : >> { %3104 = vmatprep.subr.mxu1 %v3489_v22  ;;  %v930_v41 = vand.u32 4294901760, %v929_v39  ;;  %v1890_v11 = vand.u32 4294901760, %v1889_v5 }
 0x41a   : >> { %3105 = vmatpush3.msk.msra.mxu1 %vm3660_vm2, %v3491_v23 }
 0x41b   : >> { %3072 = vmatmul.mubr.f32.vlgmr.msra.gmra.mxu0 %v930_v41  ;;  %3107 = vmatmul.mubr.f32.vlgmr.msra.gmra.mxu1 %v926_v33 }
 0x41c   : >> { %3082 = vmatpush3.msra.mxu0 %v3752_v63  ;;  %3116 = vmatprep.subr.mxu1 %v3489_v22 }
 0x41d   : >> { %3083 = vmatprep.subr.mxu0 %v3489_v22  ;;  %3117 = vmatpush3.msra.mxu1 %v3838_v42 }
 0x41e   : >> { %3084 = vmatpush3.msra.mxu0 %v3756_v1  ;;  %3118 = vmatprep.subr.mxu1 %v3489_v22 }
 0x41f   : >> { %3085 = vmatprep.mubr.msk.f32.mxu0 %vm3490_vm10, %v3489_v22  ;;  %3095 = vmatprep.subr.mxu0 %v3489_v22 }
 0x420   : >> { %3119 = vmatpush3.msra.mxu1 %v3848_v45  ;;  %3120 = vmatprep.mubr.msk.f32.mxu1 %vm3490_vm10, %v3489_v22 }
 0x421   : >> { %3086 = vmatmul.mubr.f32.vlgmr.msra.gmra.mxu0 %v927_v35  ;;  %3121 = vmatmul.mubr.f32.vlgmr.msra.gmra.mxu1 %v3843_v43 }
 0x422   : >> { %3096 = vmatpush3.msra.mxu0 %v3761_v3  ;;  %3130 = vmatprep.subr.mxu1 %v3489_v22 }
 0x423   : >> { %3097 = vmatprep.subr.mxu0 %v3489_v22  ;;  %3131 = vmatpush3.msk.msra.mxu1 %vm3656_vm1, %v3491_v23 }
 0x424   : >> { %3098 = vmatpush3.msra.mxu0 %v3764_v4  ;;  %3132 = vmatprep.subr.mxu1 %v3489_v22 }
 0x425   : >> { %3099 = vmatprep.mubr.msk.f32.mxu0 %vm3490_vm10, %v3489_v22  ;;  %3109 = vmatprep.subr.mxu0 %v3489_v22 }
 0x426   : >> { %3133 = vmatpush3.msk.msra.mxu1 %vm3628_vm0, %v3491_v23  ;;  %3134 = vmatprep.mubr.msk.f32.mxu1 %vm3490_vm10, %v3489_v22 }
 0x427   : >> { %3100 = vmatmul.mubr.f32.vlgmr.msra.gmra.mxu0 %v926_v33  ;;  %3135 = vmatmul.mubr.f32.vlgmr.msra.gmra.mxu1 %v1389_v50 }
 0x428   : >> { %3110 = vmatpush3.msk.msra.mxu0 %vm3656_vm1, %v3491_v23  ;;  %3144 = vmatprep.subr.mxu1 %v3489_v22 }
 0x429   : >> { %3111 = vmatprep.subr.mxu0 %v3489_v22  ;;  %3145 = vmatpush3.msk.msra.mxu1 %vm3656_vm1, %v3491_v23 }
 0x42a   : >> { %3112 = vmatpush3.msk.msra.mxu0 %vm3628_vm0, %v3491_v23  ;;  %3146 = vmatprep.subr.mxu1 %v3489_v22 }
 0x42b   : >> { %3113 = vmatprep.mubr.msk.f32.mxu0 %vm3490_vm10, %v3489_v22  ;;  %3123 = vmatprep.subr.mxu0 %v3489_v22 }
 0x42c   : >> { %3147 = vmatpush3.msk.msra.mxu1 %vm3628_vm0, %v3491_v23  ;;  %3148 = vmatprep.mubr.msk.f32.mxu1 %vm3490_vm10, %v3489_v22 }
 0x42d   : >> { %3114 = vmatmul.mubr.f32.vlgmr.msra.gmra.mxu0 %v1391_v54  ;;  %3149 = vmatmul.mubr.f32.vlgmr.msra.gmra.mxu1 %v3843_v43 }
 0x42e   : >> { %3124 = vmatpush3.msra.mxu0 %v3804_v29  ;;  %3158 = vmatprep.subr.mxu1 %v3489_v22 }
 0x42f   : >> { %3125 = vmatprep.subr.mxu0 %v3489_v22  ;;  %3159 = vmatpush3.msra.mxu1 %v3770_v15  ;;  %v2347_v15 = vand.u32 4294901760, %v2278_v7 }
 0x430   : >> { %3126 = vmatpush3.msra.mxu0 %v3809_v32  ;;  %3160 = vmatprep.subr.mxu1 %v3489_v22 }
 0x431   : >> { %3127 = vmatprep.mubr.msk.f32.mxu0 %vm3490_vm10, %v3489_v22  ;;  %3137 = vmatprep.subr.mxu0 %v3489_v22 }
 0x432   : >> { %3161 = vmatpush3.msra.mxu1 %v3778_v21  ;;  %3162 = vmatprep.mubr.msk.f32.mxu1 %vm3490_vm10, %v3489_v22  ;;  %v2348_v21 = vsub.f32 %v2278_v7, %v2347_v15 }
 0x433   : >> { %3128 = vmatmul.mubr.f32.vlgmr.msra.gmra.mxu0 %v1388_v47  ;;  %3163 = vmatmul.mubr.f32.vlgmr.msra.gmra.mxu1 %v3899_v57  ;;  %v1782_v47 = vunpack.c.l.s4 %v3492_v46 }
 0x434   : >> { %3138 = vmatpush3.msra.mxu0 %v3812_v34  ;;  %3172 = vmatprep.subr.mxu1 %v3489_v22 }
 0x435   : >> { %3139 = vmatprep.subr.mxu0 %v3489_v22  ;;  %3173 = vmatpush3.msk.msra.mxu1 %vm3672_vm3, %v3491_v23  ;;  %v1783_v54 = vunpack.c.0.s8 %v1782_v47 }
 0x436   : >> { %3140 = vmatpush3.msra.mxu0 %v3820_v36  ;;  %3174 = vmatprep.subr.mxu1 %v3489_v22 }
 0x437   : >> { %3141 = vmatprep.mubr.msk.f32.mxu0 %vm3490_vm10, %v3489_v22  ;;  %3151 = vmatprep.subr.mxu0 %v3489_v22  ;;  %v1786_v5 = vsub.s32 %v1783_v54, %v3624_v2 }
 0x438   : >> { %3175 = vmatpush3.msk.msra.mxu1 %vm3660_vm2, %v3491_v23  ;;  %3176 = vmatprep.mubr.msk.f32.mxu1 %vm3490_vm10, %v3489_v22 }
 0x439   : >> { %3142 = vmatmul.mubr.f32.vlgmr.msra.gmra.mxu0 %v3843_v43  ;;  %3177 = vmatmul.mubr.f32.vlgmr.msra.gmra.mxu1 %v1888_v0 }
 0x43a   : >> { %3152 = vmatpush3.msk.msra.mxu0 %vm3672_vm3, %v3491_v23  ;;  %3186 = vmatprep.subr.mxu1 %v3489_v22 }
 0x43b   : >> { %3153 = vmatprep.subr.mxu0 %v3489_v22  ;;  %3187 = vmatpush3.msk.msra.mxu1 %vm3672_vm3, %v3491_v23 }
 0x43c   : >> { %3154 = vmatpush3.msk.msra.mxu0 %vm3660_vm2, %v3491_v23  ;;  %3188 = vmatprep.subr.mxu1 %v3489_v22 }
 0x43d   : >> { %3155 = vmatprep.mubr.msk.f32.mxu0 %vm3490_vm10, %v3489_v22  ;;  %3165 = vmatprep.subr.mxu0 %v3489_v22 }
 0x43e   : >> { %3189 = vmatpush3.msk.msra.mxu1 %vm3660_vm2, %v3491_v23  ;;  %3190 = vmatprep.mubr.msk.f32.mxu1 %vm3490_vm10, %v3489_v22 }
 0x43f   : >> { %3156 = vmatmul.mubr.f32.vlgmr.msra.gmra.mxu0 %v1890_v11  ;;  %3191 = vmatmul.mubr.f32.vlgmr.msra.gmra.mxu1 %v3899_v57 }
 0x440   : >> { %3166 = vmatpush3.msra.mxu0 %v3752_v63  ;;  %3200 = vmatprep.subr.mxu1 %v3489_v22  ;;  %v2349_v63 = vand.u32 4294901760, %v2348_v21 }
 0x441   : >> { %3167 = vmatprep.subr.mxu0 %v3489_v22  ;;  %3201 = vmatpush3.msra.mxu1 %v3838_v42 }
 0x442   : >> { %3168 = vmatpush3.msra.mxu0 %v3756_v1  ;;  %3202 = vmatprep.subr.mxu1 %v3489_v22  ;;  %v2350_v1 = vsub.f32 %v2348_v21, %v2349_v63 }
 0x443   : >> { %3169 = vmatprep.mubr.msk.f32.mxu0 %vm3490_vm10, %v3489_v22  ;;  %3179 = vmatprep.subr.mxu0 %v3489_v22 }
 0x444   : >> { %3203 = vmatpush3.msra.mxu1 %v3848_v45  ;;  %3204 = vmatprep.mubr.msk.f32.mxu1 %vm3490_vm10, %v3489_v22 }
 0x445   : >> { %3170 = vmatmul.mubr.f32.vlgmr.msra.gmra.mxu0 %v1887_v58  ;;  %3205 = vmatmul.mubr.f32.vlgmr.msra.gmra.mxu1 %v2347_v15 }
 0x446   : >> { %3180 = vmatpush3.msra.mxu0 %v3761_v3  ;;  %3214 = vmatprep.subr.mxu1 %v3489_v22  ;;  %v2351_v3 = vand.u32 4294901760, %v2350_v1 }
 0x447   : >> { %3181 = vmatprep.subr.mxu0 %v3489_v22  ;;  %3215 = vmatpush3.msk.msra.mxu1 %vm3656_vm1, %v3491_v23 }
 0x448   : >> { %3182 = vmatpush3.msra.mxu0 %v3764_v4  ;;  %3216 = vmatprep.subr.mxu1 %v3489_v22 }
 0x449   : >> { %3183 = vmatprep.mubr.msk.f32.mxu0 %vm3490_vm10, %v3489_v22  ;;  %3193 = vmatprep.subr.mxu0 %v3489_v22 }
 0x44a   : >> { %3217 = vmatpush3.msk.msra.mxu1 %vm3628_vm0, %v3491_v23  ;;  %3218 = vmatprep.mubr.msk.f32.mxu1 %vm3490_vm10, %v3489_v22 }
 0x44b   : >> { %3184 = vmatmul.mubr.f32.vlgmr.msra.gmra.mxu0 %v3899_v57  ;;  %3219 = vmatmul.mubr.f32.vlgmr.msra.gmra.mxu1 %v2349_v63 }
 0x44c   : >> { %3194 = vmatpush3.msk.msra.mxu0 %vm3656_vm1, %v3491_v23  ;;  %3228 = vmatprep.subr.mxu1 %v3489_v22 }
 0x44d   : >> { %3195 = vmatprep.subr.mxu0 %v3489_v22  ;;  %3229 = vmatpush3.msk.msra.mxu1 %vm3656_vm1, %v3491_v23 }
 0x44e   : >> { %3196 = vmatpush3.msk.msra.mxu0 %vm3628_vm0, %v3491_v23  ;;  %3230 = vmatprep.subr.mxu1 %v3489_v22 }
 0x44f   : >> { %3197 = vmatprep.mubr.msk.f32.mxu0 %vm3490_vm10, %v3489_v22  ;;  %3207 = vmatprep.subr.mxu0 %v3489_v22 }
 0x450   : >> { %3231 = vmatpush3.msk.msra.mxu1 %vm3628_vm0, %v3491_v23  ;;  %3232 = vmatprep.mubr.msk.f32.mxu1 %vm3490_vm10, %v3489_v22 }
 0x451   : >> { %3198 = vmatmul.mubr.f32.vlgmr.msra.gmra.mxu0 %v2351_v3  ;;  %3233 = vmatmul.mubr.f32.vlgmr.msra.gmra.mxu1 %v2347_v15 }
 0x452   : >> { %3208 = vmatpush3.msra.mxu0 %v3804_v29  ;;  %3211 = vmatprep.mubr.msk.f32.mxu0 %vm3490_vm10, %v3489_v22 }
 0x453   : >> { %3209 = vmatprep.subr.mxu0 %v3489_v22 }
 0x454   : >> { %3210 = vmatpush3.msra.mxu0 %v3809_v32 }
 0x455   : >> { %3221 = vmatprep.subr.mxu0 %v3489_v22  ;;  %3212 = vmatmul.mubr.f32.vlgmr.msra.gmra.mxu0 %v2348_v21 }
 0x456   : >> { %3222 = vmatpush3.msra.mxu0 %v3812_v34  ;;  %3225 = vmatprep.mubr.msk.f32.mxu0 %vm3490_vm10, %v3489_v22 }
 0x457   : >> { %3223 = vmatprep.subr.mxu0 %v3489_v22 }
 0x458   : >> { %3224 = vmatpush3.msra.mxu0 %v3820_v36 }
 0x459   : >> { %3226 = vmatmul.mubr.f32.vlgmr.msra.gmra.mxu0 %v2347_v15 }
 0x4d3   : >> { %v1013_v4 = vpop.f32.mrf.mxu1 }
 0x4d5   : >> { %v3080_v23 = vpop.f32.mrf.mxu1 }
 0x4d7   : >> { %v1164_v24 = vpop.f32.mrf.mxu1 }
 0x4d9   : >> { %v3094_v25 = vpop.f32.mrf.mxu1 }
 0x4db   : >> { %v932_v26 = vpop.f32.mrf.mxu0  ;;  %v1314_v27 = vpop.f32.mrf.mxu1 }
 0x4dc   : >> { %v1014_v30 = vadd.f32 %v1013_v4, %v932_v26 }
 0x4dd   : >> { %v3073_v28 = vpop.f32.mrf.mxu0  ;;  %v3108_v29 = vpop.f32.mrf.mxu1 }
 0x4e1   : >> { %v1089_v31 = vpop.f32.mrf.mxu0  ;;  %v1474_v32 = vpop.f32.mrf.mxu1 }
 0x4e2   : >> { %v1090_v33 = vadd.f32 %v1089_v31, %v1014_v30 }
 0x4e3   : >> { %v3087_v34 = vpop.f32.mrf.mxu0  ;;  %v3122_v35 = vpop.f32.mrf.mxu1 }
 0x4e4   : >> { %v1165_v37 = vadd.f32 %v1164_v24, %v1090_v33 }
 0x4e7   : >> { %v1241_v38 = vpop.f32.mrf.mxu0  ;;  %v1625_v22 = vpop.f32.mrf.mxu1 }
 0x4e8   : >> { %v1242_v39 = vadd.f32 %v1241_v38, %v1165_v37 }
 0x4e9   : >> { %v3101_v36 = vpop.f32.mrf.mxu0  ;;  %v3136_v40 = vpop.f32.mrf.mxu1 }
 0x4ea   : >> { %v1315_v8 = vadd.f32 %v1314_v27, %v1242_v39 }
 0x4ed   : >> { %v1393_v9 = vpop.f32.mrf.mxu0  ;;  %v1775_v41 = vpop.f32.mrf.mxu1 }
 0x4ee   : >> { %v1394_v42 = vadd.f32 %v1393_v9, %v1315_v8 }
 0x4ef   : >> { %v3115_v43 = vpop.f32.mrf.mxu0  ;;  %v3150_v44 = vpop.f32.mrf.mxu1 }
 0x4f0   : >> { %v1475_v45 = vadd.f32 %v1474_v32, %v1394_v42 }
 0x4f3   : >> { %v1550_v48 = vpop.f32.mrf.mxu0  ;;  %v1973_v49 = vpop.f32.mrf.mxu1 }
 0x4f4   : >> { %v1551_v50 = vadd.f32 %v1550_v48, %v1475_v45 }
 0x4f5   : >> { %v3129_v51 = vpop.f32.mrf.mxu0  ;;  %v3164_v52 = vpop.f32.mrf.mxu1 }
 0x4f6   : >> { %v1626_v53 = vadd.f32 %v1625_v22, %v1551_v50 }
 0x4f9   : >> { %v1702_v57 = vpop.f32.mrf.mxu0  ;;  %v2124_v58 = vpop.f32.mrf.mxu1 }
 0x4fa   : >> { %v1703_v0 = vadd.f32 %v1702_v57, %v1626_v53 }
 0x4fb   : >> { %v3143_v7 = vpop.f32.mrf.mxu0  ;;  %v3178_v11 = vpop.f32.mrf.mxu1 }
 0x4fc   : >> { %v1776_v15 = vadd.f32 %v1775_v41, %v1703_v0 }
 0x4fe   : >> { %v1787_v21 = vrot.slane %v1776_v15, %v1786_v5 }
 0x4ff   : >> { %v1892_v63 = vpop.f32.mrf.mxu0  ;;  %v2274_v1 = vpop.f32.mrf.mxu1 }
 0x500   : >> { %v1788_v3 = vcombine.high %v1787_v21, %v1787_v21  ;;  %v1795_v4 = vrot.slane %v1787_v21, %v1786_v5  ;;  %v1974_v28 = vadd.f32 %v1973_v49, %v1892_v63 }
 0x501   : >> { %v3157_v23 = vpop.f32.mrf.mxu0  ;;  %v3192_v24 = vpop.f32.mrf.mxu1 }
 0x502   : >> { %v1802_v25 = vrot.slane %v1788_v3, %v1786_v5  ;;  %v1803_v26 = vcombine.high %v1795_v4, %v1795_v4  ;;  %1811 = vst.msk [vmem:[%s4018_s4] sm:$0x1] %vm1810_vm11, %v1795_v4 }
 0x504   : >> { %v1804_v27 = vcombine.high %v1802_v25, %v1802_v25  ;;  %1812 = vst.msk [vmem:[%s4018_s4 + $0x20] sm:$0x1] %vm1810_vm11, %v1802_v25  ;;  %1813 = vst.msk [vmem:[%s4018_s4 + $0x40] sm:$0x1] %vm1810_vm11, %v1803_v26 }
 0x505   : >> { %v2049_v29 = vpop.f32.mrf.mxu0  ;;  %v2434_v30 = vpop.f32.mrf.mxu1 }
 0x506   : >> { %1814 = vst.msk [vmem:[%s4018_s4 + $0x60] sm:$0x1] %vm1810_vm11, %v1804_v27  ;;  %v2050_v31 = vadd.f32 %v2049_v29, %v1974_v28 }
 0x507   : >> { %v3171_v32 = vpop.f32.mrf.mxu0  ;;  %v3206_v33 = vpop.f32.mrf.mxu1 }
 0x508   : >> { %v2125_v34 = vadd.f32 %v2124_v58, %v2050_v31 }
 0x50b   : >> { %v2201_v35 = vpop.f32.mrf.mxu0  ;;  %v2585_v37 = vpop.f32.mrf.mxu1 }
 0x50c   : >> { %v2202_v38 = vadd.f32 %v2201_v35, %v2125_v34 }
 0x50d   : >> { %v3185_v22 = vpop.f32.mrf.mxu0  ;;  %v3220_v39 = vpop.f32.mrf.mxu1 }
 0x50e   : >> { %v2275_v36 = vadd.f32 %v2274_v1, %v2202_v38 }
 0x511   : >> { %v2353_v40 = vpop.f32.mrf.mxu0  ;;  %v2735_v8 = vpop.f32.mrf.mxu1 }
 0x512   : >> { %v2354_v9 = vadd.f32 %v2353_v40, %v2275_v36 }
 0x513   : >> { %v3199_v41 = vpop.f32.mrf.mxu0  ;;  %v3234_v42 = vpop.f32.mrf.mxu1 }
 0x514   : >> { %v2435_v43 = vadd.f32 %v2434_v30, %v2354_v9 }
 0x515   : >> { %v2510_v44 = vpop.f32.mrf.mxu0 }
 0x516   : >> { %v2511_v45 = vadd.f32 %v2510_v44, %v2435_v43 }
 0x517   : >> { %v3213_v46 = vpop.f32.mrf.mxu0 }
 0x518   : >> { %v2586_v47 = vadd.f32 %v2585_v37, %v2511_v45 }
 0x519   : >> { %v2662_v48 = vpop.f32.mrf.mxu0 }
 0x51a   : >> { %v2663_v49 = vadd.f32 %v2662_v48, %v2586_v47 }
 0x51b   : >> { %v3227_v50 = vpop.f32.mrf.mxu0 }
 0x51c   : >> { %v2736_v51 = vadd.f32 %v2735_v8, %v2663_v49 }
 0x51e   : >> { %v2747_v52 = vrot.slane %v2736_v51, %v1786_v5 }
 0x520   : >> { %v2748_v53 = vcombine.high %v2747_v52, %v2747_v52  ;;  %v2755_v54 = vrot.slane %v2747_v52, %v1786_v5 }
 0x522   : >> { %v2762_v57 = vrot.slane %v2748_v53, %v1786_v5  ;;  %v2763_v58 = vcombine.high %v2755_v54, %v2755_v54  ;;  %2936 = vst.msk [vmem:[%s4018_s4 + $0x1] sm:$0x1] %vm1810_vm11, %v2755_v54  ;;  %824 = sbr.rel (!%p822_p13) target bundleno = 905 (0x389), region = 126 }
 0x524   : >> { %v2764_v0 = vcombine.high %v2762_v57, %v2762_v57  ;;  %2937 = vst.msk [vmem:[%s4018_s4 + $0x21] sm:$0x1] %vm1810_vm11, %v2762_v57  ;;  %2938 = vst.msk [vmem:[%s4018_s4 + $0x41] sm:$0x1] %vm1810_vm11, %v2763_v58 }
 0x526   : >> { %2939 = vst.msk [vmem:[%s4018_s4 + $0x61] sm:$0x1] %vm1810_vm11, %v2764_v0 }
 0x527   : > { %3388 = shalt.err (!%p3385_p9)
}
 0x528   : > { %s3389_s26 = scalar_lea.hbm %s4043_s8, 2048  ;;  %s3393_s29 = scalar_lea.hbm %s4092_s3, 4096 }
 0x529   : > { %p3390_p1 = scmp.ne.s32.totalorder %s4043_s8, %s3389_s26  ;;  %p3394_p11 = scmp.lt.s32.totalorder %s4043_s8, %s4092_s3 }
 0x52a   : > { %p3395_p12 = scmp.lt.s32.totalorder %s3393_s29, %s3389_s26 }
 0x52b   : > { %p3391_p3 = pnand %p3390_p1, %p4112_p5 }
 0x52c   : > { %p3396_p13 = por %p3395_p12, %p3394_p11 }
 0x52d   : > { %p3392_p6 = pneg %p3391_p3 }
 0x52f   : > { %p3397_p4 = pnand %p3396_p13, %p3392_p6 }
 0x531   : > { %3400 = shalt.err (!%p3397_p4)
}
 0x532   : > { %s3494_s10 = smov 128   ;;  %s3495_s4 = smov 8  }
 0x533   : > { %3243 = dma.vmem_to_hbm [thread:$0]  (%p4112_p5), %s4046_s17, 2048, %s4043_s8, %s2775_s11, %s3494_s10, %s3494_s10, %s3495_s4  }
 0x534 PF: > { %s2803_s6 = sand.u32 1, %s3447_s12   ;;  %p4113_p7 = scmp.ne.s32.totalorder %s4098_s25, 0 }
 0x535   : > { %p4114_p8 = scmp.ge.s32.totalorder %s3459_s15, 2  ;;  %s2804_s7 = scalar_lea.sflag [#allocation5], %s2803_s6 }
 0x537   : > { %p3250_p10 = pnand %p4114_p8, %p4113_p7 }
 0x539   : > { %p3251_p0 = pneg %p3250_p10 }
 0x53b   : > { %3442 = dma.done.wait (%p3251_p0), %s2804_s7, 2048  }
 0x53c   : > { %3444 = vsyncadd (%p3251_p0), %s2804_s7, 4294965248  ;;  %p16_p2 = scmp.ge.s32.totalorder %s3541_s18, 4   ;;  %s4115_s12 = smov %s3451_s13 }
 0x53d   : > { %s4116_s13 = smov %s3455_s14  ;;  %s4117_s14 = smov %s3553_s21 }
 0x53e   : > { %s4118_s15 = smov %s3541_s18  ;;  %18 = sbr.rel (!%p16_p2) target bundleno = 5 (0x5), region = 137 }
 0x543   :  { %2809 = vsyncpa [#allocation4], 1 }
 0x544   :  { %2811 = vsyncpa [#allocation4 + $0x1], 1 }
 0x545   :  { %2812 = vsyncpa [#allocation5], 1 }
 0x546   :  { %2814 = vsyncpa [#allocation5 + $0x1], 1 }

</bundles_post_ra>
